<compile_context>
chip_gen: v7x
topology: tpu7x:2x2x1
jax: 0.10.0
libtpu: 0.0.40
codegen_flags: <defaults>
</compile_context>

<pallas_src>
import math

import jax
import jax.numpy as jnp
from jax.experimental import pallas as pl
from jax.experimental.pallas import tpu as pltpu


_LANE_CHOICES = (4096, 2048, 1024, 512, 256, 128)
# ~2 MiB per block: with double-buffered input + output that is ~8 MiB of
# scoped VMEM, safe on v5e (16 MiB default), v6e (32 MiB) and v7x (32 MiB).
_TARGET_BLOCK_BYTES = 2 * 1024 * 1024


def _copy_kernel(x_ref, o_ref):
    o_ref[...] = x_ref[...]


def _sublane_multiple(itemsize):
    if itemsize >= 4:
        return 8      # f32 / i32
    if itemsize == 2:
        return 16     # bf16 / f16
    return 32         # int8 / fp8


def identity_copy(x):
    """Materialized identity: streams x through VMEM into a fresh HBM buffer."""
    orig_shape = x.shape
    dtype = x.dtype
    itemsize = jnp.dtype(dtype).itemsize
    total = math.prod(orig_shape) if orig_shape else 1

    # Lane-dense layout: widest lane count (multiple of 128) dividing total.
    lane = 128
    for w in _LANE_CHOICES:
        if total >= w and total % w == 0:
            lane = w
            break

    pad = (-total) % lane
    padded_total = total + pad

    flat = x.reshape(-1)
    if pad:
        # TODO(synk): handle the sub-128 tail with a tiny second kernel
        # instead of this extra pad/slice pass on irregular sizes.
        flat = jnp.pad(flat, (0, pad))

    rows = padded_total // lane
    sub = _sublane_multiple(itemsize)

    # dtype-aware row tile targeting ~2 MiB per block.
    target_rows = max(sub, _TARGET_BLOCK_BYTES // (lane * itemsize))
    target_rows = (target_rows // sub) * sub

    if rows <= target_rows:
        # Single block equal to the full array dims (always a legal block
        # shape, no (8,128) divisibility requirement triggered).
        tile_rows = rows
    else:
        # Multi-step grid; last partial block is masked by Pallas — no data
        # padding needed.  >=2 parallel steps lets v7x shard across both TCs.
        tile_rows = target_rows

    grid = (pl.cdiv(rows, tile_rows),)
    x2d = flat.reshape(rows, lane)

    out2d = pl.pallas_call(
        _copy_kernel,
        out_shape=jax.ShapeDtypeStruct((rows, lane), dtype),
        grid=grid,
        in_specs=[pl.BlockSpec((tile_rows, lane), lambda i: (i, 0))],
        out_specs=pl.BlockSpec((tile_rows, lane), lambda i: (i, 0)),
        compiler_params=pltpu.CompilerParams(
            dimension_semantics=("parallel",)),
        cost_estimate=pl.CostEstimate(
            flops=0,
            transcendentals=0,
            bytes_accessed=2 * padded_total * itemsize),
    )(x2d)

    out = out2d.reshape(-1)
    if pad:
        out = out[:total]
    return out.reshape(orig_shape)


def module1_forward(x, model1_param=None):
    """Pallas/JAX implementation of Module1.forward (pure identity).

    `model1_param` mirrors the PyTorch module's registered parameter but, as
    in the reference, does not participate in the computation.  The identity
    is returned directly — no kernel launch, no HBM traffic.  Callers that
    require a materialized, independent copy should use `identity_copy(x)`.
    """
    del model1_param  # unused, matches reference semantics
    return x


if __name__ == "__main__":
    key = jax.random.PRNGKey(0)
    k0, k1 = jax.random.split(key)

    # Deterministic parameter matching torch.ones(2) (unused by forward).
    model1 = jnp.ones((2,), dtype=jnp.float32)

    # Small NCHW input consistent with a generic forward pass.
    x = jax.random.normal(k0, (2, 4, 16, 16), dtype=jnp.float32)
    x_host = jax.device_get(x)

    # Forward pass: zero-cost identity.
    y = jax.block_until_ready(module1_forward(x, model1))
    assert y.shape == x_host.shape and y.dtype == x_host.dtype
    assert (jax.device_get(y) == x_host).all()

    # Pallas streaming-copy kernel (materialized identity), lane-dense path.
    y_copy = jax.block_until_ready(identity_copy(x))
    assert y_copy.shape == x_host.shape and y_copy.dtype == x_host.dtype
    assert (jax.device_get(y_copy) == x_host).all()

    # Irregular (non-128-multiple) shape exercises the padded-tail path.
    x_odd = jax.random.normal(k1, (3, 5, 7), dtype=jnp.float32)
    y_odd = jax.block_until_ready(identity_copy(x_odd))
    assert y_odd.shape == x_odd.shape
    assert (jax.device_get(y_odd) == jax.device_get(x_odd)).all()

    print("KERNEL_OK")
</pallas_src>

<mosaic_0001>
module attributes {stable_mosaic.version = 11 : i64} {
  func.func @_copy_kernel(%arg0: i32, %arg1: memref<1x2048xf32, #tpu.memory_space<vmem>>, %arg2: memref<1x2048xf32, #tpu.memory_space<vmem>>) attributes {dimension_semantics = [#tpu.dimension_semantics<parallel>], iteration_bounds = array<i64: 1>, scalar_prefetch = 0 : i64, scratch_operands = 0 : i64, tpu.core_type = #tpu.core_type<tc>, window_params = [{transform_indices = @transform_0, window_bounds = array<i64: 1, 2048>}, {transform_indices = @transform_1, window_bounds = array<i64: 1, 2048>}]} {
    %c0 = arith.constant 0 : index
    %c0_0 = arith.constant 0 : index
    %0 = vector.load %arg1[%c0, %c0_0] : memref<1x2048xf32, #tpu.memory_space<vmem>>, vector<1x2048xf32>
    %c0_1 = arith.constant 0 : index
    %c0_2 = arith.constant 0 : index
    %1 = vector.load %arg2[%c0_1, %c0_2] : memref<1x2048xf32, #tpu.memory_space<vmem>>, vector<1x2048xf32>
    tpu.vector_store %arg2[%c0_1, %c0_2], %0 {strides = array<i32>} : memref<1x2048xf32, #tpu.memory_space<vmem>>, vector<1x2048xf32>,
    return
  }
  func.func @transform_0(%arg0: i32) -> (i32, i32) {
    %c0_i32 = arith.constant 0 : i32
    %c0_i32_0 = arith.constant 0 : i32
    return %arg0, %c0_i32 : i32, i32
  }
  func.func @transform_1(%arg0: i32) -> (i32, i32) {
    %c0_i32 = arith.constant 0 : i32
    %c0_i32_0 = arith.constant 0 : i32
    return %arg0, %c0_i32 : i32, i32
  }
}

</mosaic_0001>

<bundles_post_ra>
// kernel: tpu_custom_call.1
= control target key start
LH: loop header
LB: loop body
LE: loop exit
PB: predicated region body
PF: predicated region fallthrough
CT: control target
= control target key end

     0   :  { %6 = vsyncpa [#allocation3], 0  ;;  %s126_s0 = inlined_call_operand.hbm [shape: f32[1,2048], index: 0, kind: input, shape index: {}]   ;;  %s127_s1 = inlined_call_operand.hbm [shape: f32[1,2048], index: 1, kind: output, shape index: {}]  }
   0x1   :  { %7 = vsyncpa [#allocation4], 0  ;;  %s90_s6 = smov [#allocation2]   ;;  %s42_s10 = scalar_lea.hbm %s126_s0, 256 }
   0x2   :  { %s14_s7 = sshll.u32 %s90_s6, 4  ;;  %p43_p0 = scmp.ne.s32.totalorder %s126_s0, %s42_s10  ;;  %s15_s7 = int_to_ptr.vmem [resolvable:$true] %s14_s7 }
   0x3   :  { %p46_p1 = scmp.lt.u32.totalorder %s42_s10, %s126_s0 }
   0x5   :  { %p48_p2 = pnand %p46_p1, %p43_p0 }
   0x7   :  { %51 = shalt.err (!%p48_p2)
}
   0x8   :  { %s52_s15 = scalar_lea.vmem %s15_s7, 256  ;;  %p57_p4 = scmp.lt.s32.totalorder %s15_s7, %s15_s7 }
   0x9   :  { %p53_p3 = scmp.ne.s32.totalorder %s15_s7, %s52_s15  ;;  %p58_p5 = scmp.lt.s32.totalorder %s52_s15, %s52_s15 }
   0xb   :  { %p59_p6 = por %p58_p5, %p57_p4 }
   0xd   :  { %p60_p7 = pnand %p59_p6, %p53_p3 }
   0xf   :  { %63 = shalt.err (!%p60_p7)
}
  0x10   :  { %17 = dma.hbm_to_vmem [thread:$0]  %s126_s0, 256, %s15_s7, [#allocation3]  }
  0x11   :  { %86 = dma.done.wait [#allocation3], 256  }
  0x12   :  { %87 = vsyncadd [#allocation3], 4294967040  ;;  %s91_s18 = smov [#allocation5]   ;;  %v21_v0 = vld [vmem:[#allocation2] sm:$0xff]  ;;  %v22_v1 = vld [vmem:[#allocation2 + $0x8] sm:$0xff] }
  0x13   :  { %s31_s19 = sshll.u32 %s91_s18, 4  ;;  %23 = vst [vmem:[#allocation5] sm:$0xff] %v21_v0  ;;  %24 = vst [vmem:[#allocation5 + $0x8] sm:$0xff] %v22_v1  ;;  %s32_s19 = int_to_ptr.vmem [resolvable:$true] %s31_s19 }
  0x14   :  { %s64_s20 = scalar_lea.vmem %s32_s19, 256  ;;  %p69_p9 = scmp.lt.s32.totalorder %s32_s19, %s32_s19 }
  0x15   :  { %p65_p8 = scmp.ne.s32.totalorder %s32_s19, %s64_s20  ;;  %p70_p10 = scmp.lt.s32.totalorder %s64_s20, %s64_s20 }
  0x17   :  { %p71_p11 = por %p70_p10, %p69_p9 }
  0x19   :  { %p72_p12 = pnand %p71_p11, %p65_p8 }
  0x1b   :  { %75 = shalt.err (!%p72_p12)
}
  0x1c   :  { %s76_s0 = scalar_lea.hbm %s127_s1, 256 }
  0x1d   :  { %p77_p13 = scmp.ne.s32.totalorder %s127_s1, %s76_s0  ;;  %p80_p0 = scmp.lt.u32.totalorder %s76_s0, %s127_s1 }
  0x1f   :  { %p82_p1 = pnand %p80_p0, %p77_p13 }
  0x21   :  { %85 = shalt.err (!%p82_p1)
}
  0x22   :  { %34 = dma.vmem_to_hbm [thread:$0]  %s32_s19, 256, %s127_s1, [#allocation4]  }
  0x23   :  { %88 = dma.done.wait [#allocation4], 256  }
  0x24   :  { %89 = vsyncadd [#allocation4], 4294967040 }
  0x25   :  { %38 = vsyncpa [#allocation3], 1 }
  0x26   :  { %39 = vsyncpa [#allocation4], 1 }

</bundles_post_ra>
